<compile_context>
chip_gen: v5e
topology: v5e:2x2
jax: 0.10.0
libtpu: 0.0.40
codegen_flags: <defaults>
</compile_context>

<pallas_src>
import functools

import jax
import jax.numpy as jnp
from jax import lax
from jax.experimental import pallas as pl
from jax.experimental.pallas import tpu as pltpu


def _valuenet_kernel(s_ref,
                     w1_ref, b1_ref,
                     w2_ref, b2_ref,
                     w3_ref, b3_ref,
                     w4_ref, b4_ref,
                     out_ref):
    """Whole 4-layer MLP for one batch tile, fused in VMEM."""
    x = s_ref[...].astype(jnp.bfloat16)                                   # [T, S]

    h = jnp.dot(x, w1_ref[...], preferred_element_type=jnp.float32) + b1_ref[...]
    h = jnp.maximum(h.astype(jnp.bfloat16), 0)                            # [T, 256]

    h = jnp.dot(h, w2_ref[...], preferred_element_type=jnp.float32) + b2_ref[...]
    h = jnp.maximum(h.astype(jnp.bfloat16), 0)                            # [T, 128]

    h = jnp.dot(h, w3_ref[...], preferred_element_type=jnp.float32) + b3_ref[...]
    h = jnp.maximum(h.astype(jnp.bfloat16), 0)                            # [T, 64]

    # Final 64 -> 1 layer: out[0, t] = sum_k w4[0, k] * h[t, k].
    # Contracting the LAST dims of both operands (attention q@k^T pattern;
    # handled natively by the MXU with a transposed-operand load, no [T,64]
    # XLU transpose) lands the result directly as a lane-dense (1, T) row,
    # so the output store is unmasked and the writeback DMA is dense.
    v = lax.dot_general(w4_ref[...], h,
                        dimension_numbers=(((1,), (1,)), ((), ())),
                        preferred_element_type=jnp.float32)               # [1, T]
    out_ref[...] = (v + b4_ref[...]).astype(out_ref.dtype)


def _round_up(x, m):
    return (x + m - 1) // m * m


def prepare_valuenet_params(params):
    """One-time (outside the hot loop) bf16 cast + layout prep of the weights."""
    w1, b1, w2, b2, w3, b3, w4, b4 = params
    return (w1.astype(jnp.bfloat16), b1,
            w2.astype(jnp.bfloat16), b2,
            w3.astype(jnp.bfloat16), b3,
            w4.reshape(1, -1).astype(jnp.bfloat16),   # row vector for last layer
            b4.reshape(1, 1).astype(jnp.float32))


@functools.partial(jax.jit, static_argnames=("batch_tile",))
def valuenet_forward(s, prepared_params, batch_tile=2048):
    """s: [B, state_size] float32 -> value: [B, 1] float32."""
    w1b, b1, w2b, b2, w3b, b3, w4r, b4 = prepared_params
    B, state_size = s.shape
    h1, h2, h3 = w1b.shape[1], w2b.shape[1], w3b.shape[1]

    # ---- batch-tile selection (B / batch_tile are static under jit) ----
    bt = max(128, _round_up(int(batch_tile), 128))   # lane/MXU friendly
    bt = min(bt, _round_up(B, 128))                  # never bigger than the batch
    if B >= 256:
        # Keep >= 2 roughly balanced grid steps so the "parallel" axis can be
        # sharded across both v7x TensorCores.
        bt = min(bt, _round_up((B + 1) // 2, 128))
    num_tiles = pl.cdiv(B, bt)                       # ragged last tile, no padding

    def rep(shape):
        # Replicated operand: constant block index across the grid -> DMA'd
        # into VMEM once and reused for every batch tile.
        return pl.BlockSpec(shape, lambda i: (0, 0))

    grid_spec = pltpu.PrefetchScalarGridSpec(
        num_scalar_prefetch=0,
        grid=(num_tiles,),
        in_specs=[
            pl.BlockSpec((bt, state_size), lambda i: (i, 0)),
            rep((state_size, h1)), rep((1, h1)),
            rep((h1, h2)), rep((1, h2)),
            rep((h2, h3)), rep((1, h3)),
            rep((1, h3)), rep((1, 1)),
        ],
        # Lane-dense output: one (1, bt) row per grid step (edge store masked).
        out_specs=pl.BlockSpec((1, bt), lambda i: (0, i)),
    )

    # VMEM budget per row (f32 + bf16 intermediates, lane-padded 32->128 f32
    # input double buffer) is ~4 KB; raise the scoped-VMEM limit explicitly
    # when a big tile would exceed v5e's 16 MiB default.
    per_row_bytes = (256 + 128 + 128) * 4 + (128 + 256 + 128 + 128) * 2 + 2 * 128 * 4
    vmem_est = bt * per_row_bytes + (2 << 20)        # + weights / output / slack
    cp_kwargs = dict(dimension_semantics=("parallel",))
    if vmem_est > (14 << 20):
        cp_kwargs["vmem_limit_bytes"] = min(int(vmem_est * 3 // 2), 48 << 20)

    out = pl.pallas_call(
        _valuenet_kernel,
        out_shape=jax.ShapeDtypeStruct((1, B), jnp.float32),
        grid_spec=grid_spec,
        compiler_params=pltpu.CompilerParams(**cp_kwargs),
    )(s, w1b, b1, w2b, b2, w3b, b3, w4r, b4)

    return out[0, :][:, None]


def init_valuenet_params(key, state_size, hidden_dim=(256, 128, 64)):
    """Deterministic init mirroring nn.Linear's U(-1/sqrt(fan_in), 1/sqrt(fan_in))."""
    dims = [state_size, *hidden_dim, 1]
    params = []
    keys = jax.random.split(key, 2 * (len(dims) - 1))
    for li in range(len(dims) - 1):
        fan_in, fan_out = dims[li], dims[li + 1]
        bound = 1.0 / jnp.sqrt(jnp.float32(fan_in))
        w = jax.random.uniform(keys[2 * li], (fan_in, fan_out),
                               minval=-bound, maxval=bound, dtype=jnp.float32)
        b = jax.random.uniform(keys[2 * li + 1], (1, fan_out),
                               minval=-bound, maxval=bound, dtype=jnp.float32)
        params += [w, b]
    return tuple(params)


def valuenet_reference(s, params):
    """Pure-JAX reference emulating the kernel's bf16 MXU operands / f32 accumulation."""
    w1, b1, w2, b2, w3, b3, w4, b4 = params

    def mm(a, w):
        return jnp.dot(a.astype(jnp.bfloat16), w.astype(jnp.bfloat16),
                       preferred_element_type=jnp.float32)

    h = jnp.maximum(mm(s, w1) + b1, 0.0)
    h = jnp.maximum(mm(h, w2) + b2, 0.0)
    h = jnp.maximum(mm(h, w3) + b3, 0.0)
    return mm(h, w4) + b4


if __name__ == "__main__":
    key = jax.random.PRNGKey(0)
    k_param, k_input = jax.random.split(key)

    state_size = 32
    batch = 200   # deliberately NOT a tile multiple: exercises the ragged edge block

    params = init_valuenet_params(k_param, state_size)
    prepared = prepare_valuenet_params(params)   # one-time bf16 cast, outside the jit
    s = jax.random.normal(k_input, (batch, state_size), dtype=jnp.float32)

    ref = valuenet_reference(s, params)

    # Small explicit tile -> 2-step grid with a partial last block.
    v_small = jax.block_until_ready(valuenet_forward(s, prepared, batch_tile=128))
    # Default big-tile path (tile capped to the rounded batch -> single step).
    v_default = jax.block_until_ready(valuenet_forward(s, prepared))

    for v in (v_small, v_default):
        assert v.shape == (batch, 1)
        max_err = float(jnp.max(jnp.abs(v - ref)))
        assert jnp.allclose(v, ref, atol=1e-4, rtol=1e-4), \
            f"mismatch vs reference (max abs err {max_err})"

    print("KERNEL_OK")
</pallas_src>

<mosaic_0001>
module attributes {stable_mosaic.version = 11 : i64} {
  func.func @_valuenet_kernel(%arg0: i32, %arg1: memref<128x32xf32, #tpu.memory_space<vmem>>, %arg2: memref<32x256xbf16, #tpu.memory_space<vmem>>, %arg3: memref<1x256xf32, #tpu.memory_space<vmem>>, %arg4: memref<256x128xbf16, #tpu.memory_space<vmem>>, %arg5: memref<1x128xf32, #tpu.memory_space<vmem>>, %arg6: memref<128x64xbf16, #tpu.memory_space<vmem>>, %arg7: memref<1x64xf32, #tpu.memory_space<vmem>>, %arg8: memref<1x64xbf16, #tpu.memory_space<vmem>>, %arg9: memref<1x1xf32, #tpu.memory_space<vmem>>, %arg10: memref<1x128xf32, #tpu.memory_space<vmem>>) attributes {dimension_semantics = [#tpu.dimension_semantics<parallel>], iteration_bounds = array<i64: 2>, scalar_prefetch = 0 : i64, scratch_operands = 0 : i64, tpu.core_type = #tpu.core_type<tc>, window_params = [{transform_indices = @transform_0, window_bounds = array<i64: 128, 32>}, {pipeline_mode = #tpu.pipeline_mode<synchronous>, transform_indices = @transform_1, window_bounds = array<i64: 32, 256>}, {pipeline_mode = #tpu.pipeline_mode<synchronous>, transform_indices = @transform_2, window_bounds = array<i64: 1, 256>}, {pipeline_mode = #tpu.pipeline_mode<synchronous>, transform_indices = @transform_3, window_bounds = array<i64: 256, 128>}, {pipeline_mode = #tpu.pipeline_mode<synchronous>, transform_indices = @transform_4, window_bounds = array<i64: 1, 128>}, {pipeline_mode = #tpu.pipeline_mode<synchronous>, transform_indices = @transform_5, window_bounds = array<i64: 128, 64>}, {pipeline_mode = #tpu.pipeline_mode<synchronous>, transform_indices = @transform_6, window_bounds = array<i64: 1, 64>}, {pipeline_mode = #tpu.pipeline_mode<synchronous>, transform_indices = @transform_7, window_bounds = array<i64: 1, 64>}, {pipeline_mode = #tpu.pipeline_mode<synchronous>, transform_indices = @transform_8, window_bounds = array<i64: 1, 1>}, {transform_indices = @transform_9, window_bounds = array<i64: 1, 128>}]} {
    %c0 = arith.constant 0 : index
    %c0_0 = arith.constant 0 : index
    %0 = vector.load %arg1[%c0, %c0_0] : memref<128x32xf32, #tpu.memory_space<vmem>>, vector<128x32xf32>
    %1 = arith.truncf %0 : vector<128x32xf32> to vector<128x32xbf16>
    %c0_1 = arith.constant 0 : index
    %c0_2 = arith.constant 0 : index
    %2 = vector.load %arg2[%c0_1, %c0_2] : memref<32x256xbf16, #tpu.memory_space<vmem>>, vector<32x256xbf16>
    %cst = arith.constant dense<0.000000e+00> : vector<128x256xf32>
    %3 = tpu.matmul %1, %2, %cst {dimension_numbers = #tpu.dot_dimension_numbers<[1], [0], [0], [1], [0, 0, 1, 1], [], []>} : vector<128x32xbf16>, vector<32x256xbf16>, vector<128x256xf32> -> vector<128x256xf32>
    %c0_3 = arith.constant 0 : index
    %c0_4 = arith.constant 0 : index
    %4 = vector.load %arg3[%c0_3, %c0_4] : memref<1x256xf32, #tpu.memory_space<vmem>>, vector<1x256xf32>
    %5 = vector.broadcast %4 : vector<1x256xf32> to vector<128x256xf32>
    %6 = arith.addf %3, %5 : vector<128x256xf32>
    %7 = arith.truncf %6 : vector<128x256xf32> to vector<128x256xbf16>
    %cst_5 = arith.constant 0.000000e+00 : bf16
    %8 = vector.broadcast %cst_5 : bf16 to vector<128x256xbf16>
    %9 = arith.maximumf %7, %8 : vector<128x256xbf16>
    %c0_6 = arith.constant 0 : index
    %c0_7 = arith.constant 0 : index
    %10 = vector.load %arg4[%c0_6, %c0_7] : memref<256x128xbf16, #tpu.memory_space<vmem>>, vector<256x128xbf16>
    %cst_8 = arith.constant dense<0.000000e+00> : vector<128x128xf32>
    %11 = tpu.matmul %9, %10, %cst_8 {dimension_numbers = #tpu.dot_dimension_numbers<[1], [0], [0], [1], [0, 0, 1, 1], [], []>} : vector<128x256xbf16>, vector<256x128xbf16>, vector<128x128xf32> -> vector<128x128xf32>
    %c0_9 = arith.constant 0 : index
    %c0_10 = arith.constant 0 : index
    %12 = vector.load %arg5[%c0_9, %c0_10] : memref<1x128xf32, #tpu.memory_space<vmem>>, vector<1x128xf32>
    %13 = vector.broadcast %12 : vector<1x128xf32> to vector<128x128xf32>
    %14 = arith.addf %11, %13 : vector<128x128xf32>
    %15 = arith.truncf %14 : vector<128x128xf32> to vector<128x128xbf16>
    %cst_11 = arith.constant 0.000000e+00 : bf16
    %16 = vector.broadcast %cst_11 : bf16 to vector<128x128xbf16>
    %17 = arith.maximumf %15, %16 : vector<128x128xbf16>
    %c0_12 = arith.constant 0 : index
    %c0_13 = arith.constant 0 : index
    %18 = vector.load %arg6[%c0_12, %c0_13] : memref<128x64xbf16, #tpu.memory_space<vmem>>, vector<128x64xbf16>
    %cst_14 = arith.constant dense<0.000000e+00> : vector<128x64xf32>
    %19 = tpu.matmul %17, %18, %cst_14 {dimension_numbers = #tpu.dot_dimension_numbers<[1], [0], [0], [1], [0, 0, 1, 1], [], []>} : vector<128x128xbf16>, vector<128x64xbf16>, vector<128x64xf32> -> vector<128x64xf32>
    %c0_15 = arith.constant 0 : index
    %c0_16 = arith.constant 0 : index
    %20 = vector.load %arg7[%c0_15, %c0_16] : memref<1x64xf32, #tpu.memory_space<vmem>>, vector<1x64xf32>
    %21 = vector.broadcast %20 : vector<1x64xf32> to vector<128x64xf32>
    %22 = arith.addf %19, %21 : vector<128x64xf32>
    %23 = arith.truncf %22 : vector<128x64xf32> to vector<128x64xbf16>
    %cst_17 = arith.constant 0.000000e+00 : bf16
    %24 = vector.broadcast %cst_17 : bf16 to vector<128x64xbf16>
    %25 = arith.maximumf %23, %24 : vector<128x64xbf16>
    %c0_18 = arith.constant 0 : index
    %c0_19 = arith.constant 0 : index
    %26 = vector.load %arg8[%c0_18, %c0_19] : memref<1x64xbf16, #tpu.memory_space<vmem>>, vector<1x64xbf16>
    %cst_20 = arith.constant dense<0.000000e+00> : vector<1x128xf32>
    %27 = tpu.matmul %26, %25, %cst_20 {dimension_numbers = #tpu.dot_dimension_numbers<[1], [1], [0], [0], [0, 0, 1, 0], [], []>} : vector<1x64xbf16>, vector<128x64xbf16>, vector<1x128xf32> -> vector<1x128xf32>
    %c0_21 = arith.constant 0 : index
    %c0_22 = arith.constant 0 : index
    %28 = vector.load %arg9[%c0_21, %c0_22] : memref<1x1xf32, #tpu.memory_space<vmem>>, vector<1x1xf32>
    %29 = vector.broadcast %28 : vector<1x1xf32> to vector<1x128xf32>
    %30 = arith.addf %27, %29 : vector<1x128xf32>
    %c0_23 = arith.constant 0 : index
    %c0_24 = arith.constant 0 : index
    %31 = vector.load %arg10[%c0_23, %c0_24] : memref<1x128xf32, #tpu.memory_space<vmem>>, vector<1x128xf32>
    tpu.vector_store %arg10[%c0_23, %c0_24], %30 {strides = array<i32>} : memref<1x128xf32, #tpu.memory_space<vmem>>, vector<1x128xf32>,
    return
  }
  func.func @transform_0(%arg0: i32) -> (i32, i32) {
    %c0_i32 = arith.constant 0 : i32
    %c0_i32_0 = arith.constant 0 : i32
    return %arg0, %c0_i32 : i32, i32
  }
  func.func @transform_1(%arg0: i32) -> (i32, i32) {
    %c0_i32 = arith.constant 0 : i32
    %c0_i32_0 = arith.constant 0 : i32
    %c0_i32_1 = arith.constant 0 : i32
    return %c0_i32, %c0_i32_0 : i32, i32
  }
  func.func @transform_2(%arg0: i32) -> (i32, i32) {
    %c0_i32 = arith.constant 0 : i32
    %c0_i32_0 = arith.constant 0 : i32
    %c0_i32_1 = arith.constant 0 : i32
    return %c0_i32, %c0_i32_0 : i32, i32
  }
  func.func @transform_3(%arg0: i32) -> (i32, i32) {
    %c0_i32 = arith.constant 0 : i32
    %c0_i32_0 = arith.constant 0 : i32
    %c0_i32_1 = arith.constant 0 : i32
    return %c0_i32, %c0_i32_0 : i32, i32
  }
  func.func @transform_4(%arg0: i32) -> (i32, i32) {
    %c0_i32 = arith.constant 0 : i32
    %c0_i32_0 = arith.constant 0 : i32
    %c0_i32_1 = arith.constant 0 : i32
    return %c0_i32, %c0_i32_0 : i32, i32
  }
  func.func @transform_5(%arg0: i32) -> (i32, i32) {
    %c0_i32 = arith.constant 0 : i32
    %c0_i32_0 = arith.constant 0 : i32
    %c0_i32_1 = arith.constant 0 : i32
    return %c0_i32, %c0_i32_0 : i32, i32
  }
  func.func @transform_6(%arg0: i32) -> (i32, i32) {
    %c0_i32 = arith.constant 0 : i32
    %c0_i32_0 = arith.constant 0 : i32
    %c0_i32_1 = arith.constant 0 : i32
    return %c0_i32, %c0_i32_0 : i32, i32
  }
  func.func @transform_7(%arg0: i32) -> (i32, i32) {
    %c0_i32 = arith.constant 0 : i32
    %c0_i32_0 = arith.constant 0 : i32
    %c0_i32_1 = arith.constant 0 : i32
    return %c0_i32, %c0_i32_0 : i32, i32
  }
  func.func @transform_8(%arg0: i32) -> (i32, i32) {
    %c0_i32 = arith.constant 0 : i32
    %c0_i32_0 = arith.constant 0 : i32
    %c0_i32_1 = arith.constant 0 : i32
    return %c0_i32, %c0_i32_0 : i32, i32
  }
  func.func @transform_9(%arg0: i32) -> (i32, i32) {
    %c0_i32 = arith.constant 0 : i32
    %c0_i32_0 = arith.constant 0 : i32
    return %c0_i32, %arg0 : i32, i32
  }
}

</mosaic_0001>

<bundles_post_ra>
// kernel: valuenet_forward.1
= control target key start
LH: loop header
LB: loop body
LE: loop exit
PB: predicated region body
PF: predicated region fallthrough
CT: control target
= control target key end

     0   :  { %s1829_s0 = inlined_call_operand.vmem [shape: f32[200,32], index: 0, kind: input, shape index: {}]   ;;  %s1830_s1 = inlined_call_operand.vmem [shape: bf16[32,256], index: 1, kind: input, shape index: {}]   ;;  %s1831_s2 = inlined_call_operand.vmem [shape: f32[1,256], index: 2, kind: input, shape index: {}]   ;;  %s1832_s3 = inlined_call_operand.vmem [shape: bf16[256,128], index: 3, kind: input, shape index: {}]   ;;  %s1833_s4 = inlined_call_operand.vmem [shape: f32[1,128], index: 4, kind: input, shape index: {}]   ;;  %s1834_s5 = inlined_call_operand.vmem [shape: bf16[128,64], index: 5, kind: input, shape index: {}]   ;;  %s1835_s6 = inlined_call_operand.vmem [shape: f32[1,64], index: 6, kind: input, shape index: {}]   ;;  %s1836_s7 = inlined_call_operand.vmem [shape: bf16[1,64], index: 7, kind: input, shape index: {}]   ;;  %s1837_s8 = inlined_call_operand.<no memory space> [shape: f32[1,1], index: 8, kind: input, shape index: {}]   ;;  %s1838_s9 = inlined_call_operand.hbm [shape: f32[1,200], index: 9, kind: output, shape index: {}]  }
   0x1   :  { %v14_v0 = vstv %s1837_s8 }
   0x2   :  { %15 = vst [vmem:[#allocation2] sm:$0x1] %v14_v0 }
   0x3   :  { %16 = vsyncpa [#allocation4], 0 }
   0x4   :  { %18 = vsyncpa [#allocation4 + $0x1], 0  ;;  %s1537_s11 = smov 0   ;;  %s1539_s12 = smov 0  }
   0x5   :  { %s1541_s13 = smov 0   ;;  %s1543_s14 = smov 0  }
   0x6 LB: > { %s1558_s8 = sadd.s32 4294967295, %s1481_s14   ;;  %s1205_s15 = sadd.s32 4294967294, %s1481_s14   ;;  %s1481_s14 = sphi %s1543_s14, %s1844_s14   ;;  %s1477_s13 = sphi %s1541_s13, %s1843_s13   ;;  %s1473_s12 = sphi %s1539_s12, %s1842_s12   ;;  %s1469_s11 = sphi %s1537_s11, %s1841_s11  }
   0x7   : > { %s1562_s16 = sadd.s32 1, %s1481_s14   ;;  %s225_s17 = sadd.s32 1, %s1477_s13 }
   0x8   : > { %s222_s18 = ssub.s32 %s1481_s14, %s1562_s16  ;;  %p235_p0 = scmp.ne.s32.totalorder %s1477_s13, %s1473_s12 }
   0x9   : > { %p223_p1 = scmp.eq.s32.totalorder %s222_s18, 0  ;;  %p236_p2 = scmp.eq.s32.totalorder %s1558_s8, 1 }
   0xa   : > { %p241_p3 = scmp.ne.s32.totalorder %s1473_s12, %s1469_s11  ;;  %p242_p4 = scmp.eq.s32.totalorder %s1205_s15, 1 }
   0xb   : > { %s1573_s19 = scalar_select %p223_p1, %s1477_s13, %s225_s17  }
   0xc   : > { %p1575_p5 = por %p236_p2, %p235_p0  ;;  %p1579_p6 = por %p242_p4, %p241_p3 }
   0xd   : > { %p1208_p7 = scmp.ge.s32.totalorder %s1481_s14, 1  ;;  %p301_p8 = scmp.lt.s32.totalorder %s1481_s14, 3 }
   0xf   : > { %p302_p9 = pnand %p1208_p7, %p301_p8 }
  0x10   : > { %s1209_s30 = sshll.u32 (!%p302_p9), %s1558_s8, 4  ;;  %s338_s18 = sand.u32 (!%p302_p9), 1, %s1473_s12  }
  0x11   : > { %305 = sbr.rel (%p302_p9) target bundleno = 800 (0x320), region = 56  ;;  %p345_p10 = scmp.lt.s32.totalorder (!%p302_p9), %s1209_s30, 24 }
  0x12   : > { %s1146_s24 = scalar_lea.hbm (!%p302_p9), %s1838_s9, %s1558_s8  ;;  %s339_s25 = scalar_lea.vmem (!%p302_p9), [#allocation3], %s338_s18 }
  0x13   : > { %s1148_s26 = sshll.u32 (!%p302_p9), %s339_s25, 4  ;;  %s1150_s27 = sshll.u32 (!%p302_p9), %s1146_s24, 4  ;;  %s1149_s26 = int_to_ptr.vmem [resolvable:$true] %s1148_s26  ;;  %s1151_s27 = int_to_ptr.hbm [resolvable:$true] %s1150_s27 }
  0x14   : > { %s1138_s28 = scalar_lea.sflag (!%p302_p9), [#allocation4], %s338_s18  ;;  %s1439_s8 = scalar_lea.hbm (!%p302_p9), %s1838_s9, 2 }
  0x16   : > { %v1221_v1 = vld [vmem:[%s1830_s1 + $0x10] sm:$0xf]  ;;  %v1345_v2 = vld [vmem:[%s1830_s1 + $0x14] sm:$0xf0]  ;;  %v1213_v3 = vld [vmem:[%s1830_s1] sm:$0xf] }
  0x17   : > { %v1222_v4 = vor.u32 %v1345_v2, %v1221_v1  ;;  %v1343_v5 = vld [vmem:[%s1830_s1 + $0x4] sm:$0xf0]  ;;  %v1344_v6 = vld [vmem:[%s1830_s1 + $0x14] sm:$0xf]  ;;  %v1223_v7 = vld [vmem:[%s1830_s1 + $0x18] sm:$0xf0] }
  0x18   : > { %v1214_v8 = vor.u32 %v1343_v5, %v1213_v3  ;;  %s1846_s30 = smov (!%p345_p10, %s1209_s30), 24  ;;  %v1226_v9 = vor.u32 %v1344_v6, %v1223_v7  ;;  %v1342_v10 = vld [vmem:[%s1830_s1 + $0x4] sm:$0xf]  ;;  %v1215_v11 = vld [vmem:[%s1830_s1 + $0x8] sm:$0xf0]  ;;  %vm409_vm0 = vcmask 261120  }
  0x19   : > { %440 = vmatpush.bf16.msra.mxu0 %v1222_v4  ;;  %1370 = vmatpush.bf16.msra.mxu1 %v1222_v4  ;;  %s1210_s22 = sshll.u32 %s1846_s30, 3  ;;  %v1218_v17 = vor.u32 %v1342_v10, %v1215_v11  ;;  %v1353_v33 = vld [vmem:[%s1832_s3 + $0x38] sm:$0xff]  ;;  %v1352_v35 = vld [vmem:[%s1832_s3 + $0x30] sm:$0xff]  ;;  %v1351_v38 = vld [vmem:[%s1832_s3 + $0x28] sm:$0xff]  ;;  %vm1095_vm1 = vcmask 523264  }
  0x1a   : > { %1371 = vmatpush.bf16.msra.mxu2 %v1222_v4  ;;  %1372 = vmatpush.bf16.msra.mxu3 %v1222_v4  ;;  %s1613_s29 = scalar_lea.vmem %s1829_s0, %s1210_s22  ;;  %v1350_v40 = vld [vmem:[%s1832_s3 + $0x20] sm:$0xff]  ;;  %v1349_v41 = vld [vmem:[%s1832_s3 + $0x18] sm:$0xff]  ;;  %v1348_v42 = vld [vmem:[%s1832_s3 + $0x10] sm:$0xff] }
  0x1b   : > { %v355_v12 = vld [vmem:[%s1613_s29] sm:$0xff]  ;;  %v356_v13 = vld [vmem:[%s1613_s29 + $0x8] sm:$0xff]  ;;  %v357_v19 = vld [vmem:[%s1613_s29 + $0x10] sm:$0xff] }
  0x1c   : > { %v359_v14 = vld [vmem:[%s1613_s29 + $0x20] sm:$0xff]  ;;  %v371_v15 = vpack.c.bf16 %v356_v13, %v355_v12  ;;  %v360_v16 = vld [vmem:[%s1613_s29 + $0x28] sm:$0xff]  ;;  %v358_v20 = vld [vmem:[%s1613_s29 + $0x18] sm:$0xff] }
  0x1d   : > { %441 = vmatpush.bf16.msra.mxu0 %v1214_v8  ;;  %1373 = vmatpush.bf16.msra.mxu1 %v1214_v8  ;;  %v373_v18 = vpack.c.bf16 %v360_v16, %v359_v14  ;;  %v361_v21 = vld [vmem:[%s1613_s29 + $0x30] sm:$0xff]  ;;  %v362_v22 = vld [vmem:[%s1613_s29 + $0x38] sm:$0xff]  ;;  %v372_v23 = vpack.c.bf16 %v358_v20, %v357_v19  ;;  %v363_v25 = vld [vmem:[%s1613_s29 + $0x40] sm:$0xff] }
  0x1e   : > { %1374 = vmatpush.bf16.msra.mxu2 %v1214_v8  ;;  %1375 = vmatpush.bf16.msra.mxu3 %v1214_v8  ;;  %v374_v24 = vpack.c.bf16 %v362_v22, %v361_v21  ;;  %v364_v26 = vld [vmem:[%s1613_s29 + $0x48] sm:$0xff]  ;;  %v365_v28 = vld [vmem:[%s1613_s29 + $0x50] sm:$0xff]  ;;  %v366_v29 = vld [vmem:[%s1613_s29 + $0x58] sm:$0xff] }
  0x1f   : > { %v375_v27 = vpack.c.bf16 %v364_v26, %v363_v25  ;;  %v376_v30 = vpack.c.bf16 %v366_v29, %v365_v28  ;;  %v367_v31 = vld [vmem:[%s1613_s29 + $0x60] sm:$0xff]  ;;  %v368_v32 = vld [vmem:[%s1613_s29 + $0x68] sm:$0xff]  ;;  %v369_v36 = vld [vmem:[%s1613_s29 + $0x70] sm:$0xff] }
  0x20   : > { %1227 = vmatmul.msk.bf16.vlgmr.msra.gmra.mxu0 %vm409_vm0, %v371_v15  ;;  %1229 = vmatmul.msk.bf16.vlgmr.msra.gmra.mxu1 %vm409_vm0, %v373_v18  ;;  %v377_v34 = vpack.c.bf16 %v368_v32, %v367_v31  ;;  %v370_v37 = vld [vmem:[%s1613_s29 + $0x78] sm:$0xff]  ;;  %v1347_v43 = vld [vmem:[%s1832_s3 + $0x8] sm:$0xff]  ;;  %v1346_v44 = vld [vmem:[%s1832_s3] sm:$0xff]  ;;  %s1433_s29 = sshra.s32 %s1151_s27, 4  ;;  %s1434_s29 = int_to_ptr.hbm [resolvable:$true] %s1433_s29 }
  0x21   : > { %489 = vmatpush.bf16.msrb.mxu1 %v1226_v9  ;;  %1231 = vmatmul.msk.bf16.vlgmr.msra.gmra.mxu2 %vm409_vm0, %v375_v27  ;;  %v378_v39 = vpack.c.bf16 %v370_v37, %v369_v36  ;;  %v1361_v45 = vld [vmem:[%s1832_s3 + $0x78] sm:$0xff]  ;;  %v1360_v46 = vld [vmem:[%s1832_s3 + $0x70] sm:$0xff]  ;;  %v1359_v47 = vld [vmem:[%s1832_s3 + $0x68] sm:$0xff]  ;;  %s1435_s30 = scalar_lea.hbm %s1434_s29, 1  ;;  %p1440_p0 = scmp.lt.s32.totalorder %s1434_s29, %s1838_s9 }
  0x22   : > { %760 = vmatpush.bf16.msrb.mxu2 %v1353_v33  ;;  %809 = vmatpush.bf16.msrb.mxu3 %v1361_v45  ;;  %v1358_v48 = vld [vmem:[%s1832_s3 + $0x60] sm:$0xff]  ;;  %v1357_v49 = vld [vmem:[%s1832_s3 + $0x58] sm:$0xff]  ;;  %v1356_v54 = vld [vmem:[%s1832_s3 + $0x50] sm:$0xff]  ;;  %p1436_p11 = scmp.ne.s32.totalorder %s1434_s29, %s1435_s30  ;;  %p1441_p1 = scmp.lt.s32.totalorder %s1439_s8, %s1435_s30 }
  0x23   : > { %1234 = vmatmul.msk.bf16.vlgmr.msra.gmra.mxu3 %vm409_vm0, %v378_v39  ;;  %v383_v50 = vld [vmem:[%s1831_s2] sm:$0x3]  ;;  %v1355_v56 = vld [vmem:[%s1832_s3 + $0x48] sm:$0xff] }
  0x24   : > { %v1687_v53 = vperm.slane %v383_v50, 0  ;;  %v1354_v62 = vld [vmem:[%s1832_s3 + $0x40] sm:$0xff]  ;;  %v1704_v10 = vperm.slane %v383_v50, 1  ;;  %p1437_p12 = pnand %p1436_p11, %p1575_p5  ;;  %p1442_p2 = por %p1441_p1, %p1440_p0 }
  0x25   : > { %490 = vmatpush.bf16.msrb.mxu1 %v1218_v17 }
  0x26   : > { %761 = vmatpush.bf16.msrb.mxu2 %v1352_v35  ;;  %810 = vmatpush.bf16.msrb.mxu3 %v1360_v46  ;;  %p1438_p13 = pneg %p1437_p12 }
  0x28   : > { %p1443_p3 = pnand %p1442_p2, %p1438_p13 }
  0x2a   : > { %762 = vmatpush.bf16.msrb.mxu2 %v1351_v38  ;;  %811 = vmatpush.bf16.msrb.mxu3 %v1359_v47 }
  0x2e   : > { %763 = vmatpush.bf16.msrb.mxu2 %v1350_v40  ;;  %812 = vmatpush.bf16.msrb.mxu3 %v1358_v48 }
  0x30   : > { %1228 = vmatmul.msk.bf16.gmra.mxu0 %vm409_vm0, %v372_v23  ;;  %1230 = vmatmul.msk.bf16.gmra.mxu1 %vm409_vm0, %v374_v24 }
  0x31   : > { %1232 = vmatmul.msk.bf16.gmra.mxu2 %vm409_vm0, %v376_v30 }
  0x32   : > { %764 = vmatpush.bf16.msrb.mxu2 %v1349_v41  ;;  %813 = vmatpush.bf16.msrb.mxu3 %v1357_v49 }
  0x36   : > { %765 = vmatpush.bf16.msrb.mxu2 %v1348_v42  ;;  %814 = vmatpush.bf16.msrb.mxu3 %v1356_v54 }
  0x3a   : > { %766 = vmatpush.bf16.msrb.mxu2 %v1347_v43  ;;  %815 = vmatpush.bf16.msrb.mxu3 %v1355_v56 }
  0x3e   : > { %767 = vmatpush.bf16.msrb.mxu2 %v1346_v44  ;;  %816 = vmatpush.bf16.msrb.mxu3 %v1354_v62 }
  0x40   : > { %1235 = vmatmul.msk.bf16.vlgmr.msrb.gmra.mxu1 %vm409_vm0, %v371_v15 }
  0x41   : > { %1233 = vmatmul.msk.bf16.gmra.mxu2 %vm409_vm0, %v377_v34 }
  0x50   : > { %1236 = vmatmul.msk.bf16.gmra.mxu1 %vm409_vm0, %v372_v23 }
  0x60   : > { %1237 = vmatmul.msk.bf16.gmra.mxu1 %vm409_vm0, %v373_v18 }
  0x70   : > { %1238 = vmatmul.msk.bf16.gmra.mxu1 %vm409_vm0, %v374_v24 }
  0x80   : > { %1239 = vmatmul.msk.bf16.gmra.mxu1 %vm409_vm0, %v375_v27 }
  0x90   : > { %1240 = vmatmul.msk.bf16.gmra.mxu1 %vm409_vm0, %v376_v30 }
  0x9d   : > { %v443_v51 = vpop.f32.mrf.mxu0  ;;  %v453_v52 = vpop.f32.mrf.mxu1 }
  0x9e   : > { %v444_v55 = vadd.f32 %v443_v51, %v1687_v53  ;;  %v454_v12 = vadd.f32 %v453_v52, %v1687_v53 }
  0xa0   : > { %1241 = vmatmul.msk.bf16.gmra.mxu1 %vm409_vm0, %v377_v34  ;;  %v580_v58 = vmax.f32 %v444_v55, 0.0  ;;  %v588_v17 = vmax.f32 %v454_v12, 0.0 }
  0xa4   : > { %v463_v22 = vpop.f32.mrf.mxu2 }
  0xa5   : > { %v445_v57 = vpop.f32.mrf.mxu0  ;;  %v455_v60 = vpop.f32.mrf.mxu1  ;;  %v464_v38 = vadd.f32 %v463_v22, %v1687_v53 }
  0xa6   : > { %v446_v59 = vadd.f32 %v445_v57, %v1687_v53  ;;  %v456_v11 = vadd.f32 %v455_v60, %v1687_v53 }
  0xa7   : > { %v596_v40 = vmax.f32 %v464_v38, 0.0 }
  0xa8   : > { %v582_v61 = vmax.f32 %v446_v59, 0.0  ;;  %v590_v14 = vmax.f32 %v456_v11, 0.0 }
  0xaa   : > { %v612_v63 = vpack.c.bf16 %v582_v61, %v580_v58  ;;  %v616_v20 = vpack.c.bf16 %v590_v14, %v588_v17 }
  0xac   : > { %768 = vmatmul.bf16.vlgmr.msrb.gmra.mxu2 %v612_v63  ;;  %v465_v27 = vpop.f32.mrf.mxu2 }
  0xad   : > { %v448_v0 = vpop.f32.mrf.mxu0  ;;  %v458_v1 = vpop.f32.mrf.mxu1 }
  0xae   : > { %v449_v2 = vadd.f32 %v448_v0, %v1687_v53  ;;  %v459_v25 = vadd.f32 %v458_v1, %v1687_v53 }
  0xb0   : > { %1242 = vmatmul.msk.bf16.gmra.mxu1 %vm409_vm0, %v378_v39  ;;  %v584_v4 = vmax.f32 %v449_v2, 0.0  ;;  %v592_v31 = vmax.f32 %v459_v25, 0.0  ;;  %v466_v39 = vadd.f32 %v465_v27, %v1687_v53 }
  0xb2   : > { %v598_v41 = vmax.f32 %v466_v39, 0.0  ;;  %v1365_v39 = vld [vmem:[%s1834_s5 + $0x18] sm:$0xff] }
  0xb4   : > { %v468_v37 = vpop.f32.mrf.mxu2  ;;  %v620_v45 = vpack.c.bf16 %v598_v41, %v596_v40  ;;  %v1364_v41 = vld [vmem:[%s1834_s5 + $0x10] sm:$0xff] }
  0xb5   : > { %v450_v3 = vpop.f32.mrf.mxu0  ;;  %v460_v6 = vpop.f32.mrf.mxu1  ;;  %v469_v51 = vadd.f32 %v468_v37, %v1687_v53 }
  0xb6   : > { %v451_v5 = vadd.f32 %v450_v3, %v1687_v53  ;;  %v461_v24 = vadd.f32 %v460_v6, %v1687_v53 }
  0xb7   : > { %v600_v55 = vmax.f32 %v469_v51, 0.0 }
  0xb8   : > { %v586_v7 = vmax.f32 %v451_v5, 0.0  ;;  %v594_v28 = vmax.f32 %v461_v24, 0.0 }
  0xba   : > { %v614_v8 = vpack.c.bf16 %v586_v7, %v584_v4  ;;  %v618_v34 = vpack.c.bf16 %v594_v28, %v592_v31  ;;  %v478_v4 = vpop.f32.mrf.mxu3 }
  0xbb   : > { %v479_v17 = vadd.f32 %v478_v4, %v1687_v53 }
  0xbc   : > { %773 = vmatmul.bf16.gmra.mxu2 %v614_v8  ;;  %v470_v48 = vpop.f32.mrf.mxu2 }
  0xbd   : > { %v492_v9 = vpop.f32.mrf.mxu1  ;;  %v471_v52 = vadd.f32 %v470_v48, %v1687_v53 }
  0xbe   : > { %v493_v13 = vadd.f32 %v492_v9, %v1704_v10 }
  0xbf   : > { %v602_v56 = vmax.f32 %v471_v52, 0.0 }
  0xc0   : > { %v581_v18 = vmax.f32 %v493_v13, 0.0 }
  0xc1   : > { %v622_v60 = vpack.c.bf16 %v602_v56, %v600_v55  ;;  %v1761_v55 = vld [vmem:[%s1833_s4] ss:$0 sm:$0xff] }
  0xc4   : > { %v473_v54 = vpop.f32.mrf.mxu2 }
  0xc5   : > { %v494_v15 = vpop.f32.mrf.mxu1  ;;  %v474_v2 = vadd.f32 %v473_v54, %v1687_v53 }
  0xc6   : > { %v495_v16 = vadd.f32 %v494_v15, %v1704_v10  ;;  %v480_v15 = vpop.f32.mrf.mxu3 }
  0xc7   : > { %v604_v5 = vmax.f32 %v474_v2, 0.0 }
  0xc8   : > { %v583_v19 = vmax.f32 %v495_v16, 0.0 }
  0xca   : > { %v613_v21 = vpack.c.bf16 %v583_v19, %v581_v18  ;;  %v481_v18 = vadd.f32 %v480_v15, %v1687_v53  ;;  %v608_v19 = vmax.f32 %v479_v17, 0.0 }
  0xcc   : > { %778 = vmatmul.bf16.gmra.mxu2 %v616_v20  ;;  %817 = vmatmul.bf16.vlgmr.msrb.gmra.mxu3 %v613_v21  ;;  %v475_v0 = vpop.f32.mrf.mxu2  ;;  %v610_v20 = vmax.f32 %v481_v18, 0.0 }
  0xcd   : > { %v497_v23 = vpop.f32.mrf.mxu1  ;;  %v476_v3 = vadd.f32 %v475_v0, %v1687_v53  ;;  %v1368_v53 = vld [vmem:[%s1834_s5 + $0x30] sm:$0xff] }
  0xce   : > { %v498_v26 = vadd.f32 %v497_v23, %v1704_v10  ;;  %v626_v24 = vpack.c.bf16 %v610_v20, %v608_v19 }
  0xcf   : > { %v606_v6 = vmax.f32 %v476_v3, 0.0 }
  0xd0   : > { %v585_v32 = vmax.f32 %v498_v26, 0.0 }
  0xd1   : > { %v624_v11 = vpack.c.bf16 %v606_v6, %v604_v5 }
  0xd5   : > { %v499_v29 = vpop.f32.mrf.mxu1 }
  0xd6   : > { %v500_v30 = vadd.f32 %v499_v29, %v1704_v10  ;;  %v1369_v29 = vld [vmem:[%s1834_s5 + $0x38] sm:$0xff] }
  0xd7   : > { %982 = vmatpush.bf16.msrb.mxu0 %v1369_v29 }
  0xd8   : > { %v587_v33 = vmax.f32 %v500_v30, 0.0 }
  0xda   : > { %v615_v35 = vpack.c.bf16 %v587_v33, %v585_v32  ;;  %v1367_v32 = vld [vmem:[%s1834_s5 + $0x28] sm:$0xff] }
  0xdb   : > { %983 = vmatpush.bf16.msrb.mxu0 %v1368_v53 }
  0xdc   : > { %783 = vmatmul.bf16.gmra.mxu2 %v618_v34  ;;  %822 = vmatmul.bf16.gmra.mxu3 %v615_v35  ;;  %v1366_v34 = vld [vmem:[%s1834_s5 + $0x20] sm:$0xff] }
  0xdd   : > { %v502_v36 = vpop.f32.mrf.mxu1 }
  0xde   : > { %v503_v42 = vadd.f32 %v502_v36, %v1704_v10 }
  0xdf   : > { %984 = vmatpush.bf16.msrb.mxu0 %v1367_v32 }
  0xe0   : > { %v589_v46 = vmax.f32 %v503_v42, 0.0 }
  0xe3   : > { %985 = vmatpush.bf16.msrb.mxu0 %v1366_v34 }
  0xe5   : > { %v504_v43 = vpop.f32.mrf.mxu1 }
  0xe6   : > { %v505_v44 = vadd.f32 %v504_v43, %v1704_v10 }
  0xe7   : > { %986 = vmatpush.bf16.msrb.mxu0 %v1365_v39 }
  0xe8   : > { %v591_v47 = vmax.f32 %v505_v44, 0.0  ;;  %v1363_v44 = vld [vmem:[%s1834_s5 + $0x8] sm:$0xff] }
  0xea   : > { %v617_v49 = vpack.c.bf16 %v591_v47, %v589_v46 }
  0xeb   : > { %987 = vmatpush.bf16.msrb.mxu0 %v1364_v41 }
  0xec   : > { %788 = vmatmul.bf16.gmra.mxu2 %v620_v45  ;;  %827 = vmatmul.bf16.gmra.mxu3 %v617_v49  ;;  %v1362_v49 = vld [vmem:[%s1834_s5] sm:$0xff] }
  0xed   : > { %v507_v50 = vpop.f32.mrf.mxu1 }
  0xee   : > { %v508_v57 = vadd.f32 %v507_v50, %v1704_v10 }
  0xef   : > { %988 = vmatpush.bf16.msrb.mxu0 %v1363_v44 }
  0xf0   : > { %v593_v61 = vmax.f32 %v508_v57, 0.0 }
  0xf3   : > { %989 = vmatpush.bf16.msrb.mxu0 %v1362_v49 }
  0xf5   : > { %v509_v58 = vpop.f32.mrf.mxu1 }
  0xf6   : > { %v510_v59 = vadd.f32 %v509_v58, %v1704_v10 }
  0xf8   : > { %v595_v62 = vmax.f32 %v510_v59, 0.0 }
  0xfa   : > { %v619_v63 = vpack.c.bf16 %v595_v62, %v593_v61 }
  0xfc   : > { %793 = vmatmul.bf16.gmra.mxu2 %v622_v60  ;;  %832 = vmatmul.bf16.gmra.mxu3 %v619_v63 }
  0xfd   : > { %v512_v1 = vpop.f32.mrf.mxu1 }
  0xfe   : > { %v513_v7 = vadd.f32 %v512_v1, %v1704_v10 }
 0x100   : > { %v597_v12 = vmax.f32 %v513_v7, 0.0 }
 0x105   : > { %v514_v8 = vpop.f32.mrf.mxu1 }
 0x106   : > { %v515_v9 = vadd.f32 %v514_v8, %v1704_v10 }
 0x108   : > { %v599_v13 = vmax.f32 %v515_v9, 0.0 }
 0x10a   : > { %v621_v14 = vpack.c.bf16 %v599_v13, %v597_v12 }
 0x10c   : > { %798 = vmatmul.bf16.gmra.mxu2 %v624_v11  ;;  %837 = vmatmul.bf16.gmra.mxu3 %v621_v14 }
 0x10d   : > { %v517_v16 = vpop.f32.mrf.mxu1 }
 0x10e   : > { %v518_v21 = vadd.f32 %v517_v16, %v1704_v10 }
 0x110   : > { %v601_v25 = vmax.f32 %v518_v21, 0.0 }
 0x115   : > { %v519_v22 = vpop.f32.mrf.mxu1 }
 0x116   : > { %v520_v23 = vadd.f32 %v519_v22, %v1704_v10 }
 0x118   : > { %v603_v26 = vmax.f32 %v520_v23, 0.0 }
 0x11a   : > { %v623_v27 = vpack.c.bf16 %v603_v26, %v601_v25 }
 0x11c   : > { %803 = vmatmul.bf16.gmra.mxu2 %v626_v24  ;;  %842 = vmatmul.bf16.gmra.mxu3 %v623_v27 }
 0x11d   : > { %v522_v28 = vpop.f32.mrf.mxu1 }
 0x11e   : > { %v523_v30 = vadd.f32 %v522_v28, %v1704_v10 }
 0x120   : > { %v605_v35 = vmax.f32 %v523_v30, 0.0 }
 0x125   : > { %v524_v31 = vpop.f32.mrf.mxu1 }
 0x126   : > { %v525_v33 = vadd.f32 %v524_v31, %v1704_v10 }
 0x128   : > { %v607_v36 = vmax.f32 %v525_v33, 0.0 }
 0x12a   : > { %v625_v37 = vpack.c.bf16 %v607_v36, %v605_v35 }
 0x12c   : > { %847 = vmatmul.bf16.gmra.mxu3 %v625_v37 }
 0x12d   : > { %v527_v38 = vpop.f32.mrf.mxu1 }
 0x12e   : > { %v528_v42 = vadd.f32 %v527_v38, %v1704_v10 }
 0x12f   : > { %v769_v40 = vpop.f32.mrf.mxu2 }
 0x130   : > { %v609_v46 = vmax.f32 %v528_v42, 0.0 }
 0x135   : > { %v529_v43 = vpop.f32.mrf.mxu1 }
 0x136   : > { %v530_v45 = vadd.f32 %v529_v43, %v1704_v10  ;;  %v770_v10 = vadd.f32 %v1761_v55, %v769_v40 }
 0x137   : > { %v771_v48 = vpop.f32.mrf.mxu2 }
 0x138   : > { %v611_v47 = vmax.f32 %v530_v45, 0.0  ;;  %v772_v56 = vadd.f32 %v1761_v55, %v771_v48 }
 0x13a   : > { %v627_v50 = vpack.c.bf16 %v611_v47, %v609_v46 }
 0x13c   : > { %852 = vmatmul.bf16.gmra.mxu3 %v627_v50 }
 0x13f   : > { %v774_v51 = vpop.f32.mrf.mxu2 }
 0x140   : > { %v775_v2 = vadd.f32 %v1761_v55, %v774_v51 }
 0x147   : > { %v776_v52 = vpop.f32.mrf.mxu2 }
 0x148   : > { %v777_v3 = vadd.f32 %v1761_v55, %v776_v52 }
 0x14f   : > { %v818_v54 = vpop.f32.mrf.mxu3  ;;  %v779_v58 = vpop.f32.mrf.mxu2 }
 0x150   : > { %v819_v57 = vadd.f32 %v818_v54, %v770_v10  ;;  %v780_v13 = vadd.f32 %v1761_v55, %v779_v58 }
 0x152   : > { %v890_v61 = vmax.f32 %v819_v57, 0.0 }
 0x157   : > { %v820_v59 = vpop.f32.mrf.mxu3  ;;  %v781_v1 = vpop.f32.mrf.mxu2 }
 0x158   : > { %v821_v60 = vadd.f32 %v820_v59, %v772_v56  ;;  %v782_v15 = vadd.f32 %v1761_v55, %v781_v1 }
 0x15a   : > { %v891_v62 = vmax.f32 %v821_v60, 0.0 }
 0x15c   : > { %v906_v63 = vpack.c.bf16 %v891_v62, %v890_v61 }
 0x15e   : > { %990 = vmatmul.bf16.vlgmr.msrb.gmra.mxu0 %v906_v63 }
 0x15f   : > { %v823_v0 = vpop.f32.mrf.mxu3  ;;  %v784_v9 = vpop.f32.mrf.mxu2 }
 0x160   : > { %v824_v4 = vadd.f32 %v823_v0, %v775_v2  ;;  %v785_v24 = vadd.f32 %v1761_v55, %v784_v9 }
 0x162   : > { %v892_v7 = vmax.f32 %v824_v4, 0.0 }
 0x167   : > { %v825_v5 = vpop.f32.mrf.mxu3  ;;  %v786_v14 = vpop.f32.mrf.mxu2 }
 0x168   : > { %v826_v6 = vadd.f32 %v825_v5, %v777_v3  ;;  %v787_v25 = vadd.f32 %v1761_v55, %v786_v14 }
 0x16a   : > { %v893_v8 = vmax.f32 %v826_v6, 0.0 }
 0x16c   : > { %v907_v11 = vpack.c.bf16 %v893_v8, %v892_v7 }
 0x16e   : > { %995 = vmatmul.bf16.gmra.mxu0 %v907_v11 }
 0x16f   : > { %v828_v12 = vpop.f32.mrf.mxu3  ;;  %v789_v22 = vpop.f32.mrf.mxu2 }
 0x170   : > { %v829_v16 = vadd.f32 %v828_v12, %v780_v13  ;;  %v790_v34 = vadd.f32 %v1761_v55, %v789_v22  ;;  %v1418_v13 = vld [vmem:[%s1835_s6] ss:$0 sm:$0xff] }
 0x172   : > { %v894_v19 = vmax.f32 %v829_v16, 0.0 }
 0x177   : > { %v830_v17 = vpop.f32.mrf.mxu3  ;;  %v791_v27 = vpop.f32.mrf.mxu2 }
 0x178   : > { %v831_v18 = vadd.f32 %v830_v17, %v782_v15  ;;  %v792_v35 = vadd.f32 %v1761_v55, %v791_v27 }
 0x17a   : > { %v895_v20 = vmax.f32 %v831_v18, 0.0 }
 0x17c   : > { %v908_v21 = vpack.c.bf16 %v895_v20, %v894_v19 }
 0x17e   : > { %1000 = vmatmul.bf16.gmra.mxu0 %v908_v21 }
 0x17f   : > { %v833_v23 = vpop.f32.mrf.mxu3  ;;  %v794_v33 = vpop.f32.mrf.mxu2 }
 0x180   : > { %v834_v26 = vadd.f32 %v833_v23, %v785_v24  ;;  %v795_v44 = vadd.f32 %v1761_v55, %v794_v33 }
 0x182   : > { %v896_v53 = vmax.f32 %v834_v26, 0.0 }
 0x187   : > { %v835_v28 = vpop.f32.mrf.mxu3  ;;  %v796_v41 = vpop.f32.mrf.mxu2 }
 0x188   : > { %v836_v29 = vadd.f32 %v835_v28, %v787_v25  ;;  %v797_v46 = vadd.f32 %v1761_v55, %v796_v41 }
 0x18a   : > { %v897_v30 = vmax.f32 %v836_v29, 0.0 }
 0x18c   : > { %v909_v31 = vpack.c.bf16 %v897_v30, %v896_v53 }
 0x18e   : > { %1005 = vmatmul.bf16.gmra.mxu0 %v909_v31 }
 0x18f   : > { %v838_v32 = vpop.f32.mrf.mxu3  ;;  %v799_v45 = vpop.f32.mrf.mxu2 }
 0x190   : > { %v839_v36 = vadd.f32 %v838_v32, %v790_v34  ;;  %v800_v56 = vadd.f32 %v1761_v55, %v799_v45 }
 0x192   : > { %v898_v39 = vmax.f32 %v839_v36, 0.0 }
 0x197   : > { %v840_v37 = vpop.f32.mrf.mxu3  ;;  %v801_v54 = vpop.f32.mrf.mxu2 }
 0x198   : > { %v841_v38 = vadd.f32 %v840_v37, %v792_v35  ;;  %v802_v57 = vadd.f32 %v1761_v55, %v801_v54 }
 0x19a   : > { %v899_v40 = vmax.f32 %v841_v38, 0.0 }
 0x19c   : > { %v910_v42 = vpack.c.bf16 %v899_v40, %v898_v39 }
 0x19e   : > { %1010 = vmatmul.bf16.gmra.mxu0 %v910_v42 }
 0x19f   : > { %v843_v43 = vpop.f32.mrf.mxu3  ;;  %v804_v61 = vpop.f32.mrf.mxu2 }
 0x1a0   : > { %v844_v47 = vadd.f32 %v843_v43, %v795_v44  ;;  %v805_v3 = vadd.f32 %v1761_v55, %v804_v61 }
 0x1a2   : > { %v900_v50 = vmax.f32 %v844_v47, 0.0 }
 0x1a7   : > { %v845_v48 = vpop.f32.mrf.mxu3  ;;  %v806_v2 = vpop.f32.mrf.mxu2 }
 0x1a8   : > { %v846_v49 = vadd.f32 %v845_v48, %v797_v46  ;;  %v807_v4 = vadd.f32 %v1761_v55, %v806_v2 }
 0x1aa   : > { %v901_v51 = vmax.f32 %v846_v49, 0.0 }
 0x1ac   : > { %v911_v52 = vpack.c.bf16 %v901_v51, %v900_v50 }
 0x1ae   : > { %1015 = vmatmul.bf16.gmra.mxu0 %v911_v52 }
 0x1af   : > { %v848_v10 = vpop.f32.mrf.mxu3 }
 0x1b0   : > { %v849_v58 = vadd.f32 %v848_v10, %v800_v56 }
 0x1b2   : > { %v902_v62 = vmax.f32 %v849_v58, 0.0 }
 0x1b7   : > { %v850_v59 = vpop.f32.mrf.mxu3 }
 0x1b8   : > { %v851_v60 = vadd.f32 %v850_v59, %v802_v57 }
 0x1ba   : > { %v903_v63 = vmax.f32 %v851_v60, 0.0 }
 0x1bc   : > { %v912_v0 = vpack.c.bf16 %v903_v63, %v902_v62 }
 0x1be   : > { %1020 = vmatmul.bf16.gmra.mxu0 %v912_v0 }
 0x1bf   : > { %v853_v1 = vpop.f32.mrf.mxu3 }
 0x1c0   : > { %v854_v5 = vadd.f32 %v853_v1, %v805_v3 }
 0x1c2   : > { %v904_v8 = vmax.f32 %v854_v5, 0.0 }
 0x1c7   : > { %v855_v6 = vpop.f32.mrf.mxu3 }
 0x1c8   : > { %v856_v7 = vadd.f32 %v855_v6, %v807_v4 }
 0x1ca   : > { %v905_v9 = vmax.f32 %v856_v7, 0.0 }
 0x1cc   : > { %v913_v11 = vpack.c.bf16 %v905_v9, %v904_v8  ;;  %v1088_v9 = vld [vmem:[#allocation2] sm:$0x1] }
 0x1ce   : > { %1025 = vmatmul.bf16.gmra.mxu0 %v913_v11  ;;  %v1483_v11 = vmov 0  }
 0x1cf   : > { %1416 = vset.pattern.permute.xlu0 %v1483_v11 }
 0x1d0   : > { %1091 = vperm.xlu0 %1416, %v1088_v9  }
 0x1db   : > { %v991_v12 = vpop.f32.mrf.mxu0 }
 0x1dc   : > { %v992_v14 = vadd.f32 %v1418_v13, %v991_v12 }
 0x1de   : > { %v1063_v17 = vmax.f32 %v992_v14, 0.0 }
 0x1e3   : > { %v993_v15 = vpop.f32.mrf.mxu0 }
 0x1e4   : > { %v994_v16 = vadd.f32 %v1418_v13, %v993_v15  ;;  %v1087_v15 = vld [vmem:[%s1836_s7] sm:$0x1] }
 0x1e6   : > { %v1064_v18 = vmax.f32 %v994_v16, 0.0 }
 0x1e8   : > { %v1782_v19 = vpack.c.bf16 %v1064_v18, %v1063_v17 }
 0x1ea   : > { %v1100_v14 = vsel %vm1095_vm1, %v1782_v19, 0 }
 0x1eb   : > { %v996_v55 = vpop.f32.mrf.mxu0 }
 0x1ec   : > { %v997_v20 = vadd.f32 %v1418_v13, %v996_v55 }
 0x1ee   : > { %v1065_v23 = vmax.f32 %v997_v20, 0.0 }
 0x1f3   : > { %v998_v21 = vpop.f32.mrf.mxu0 }
 0x1f4   : > { %v999_v22 = vadd.f32 %v1418_v13, %v998_v21 }
 0x1f6   : > { %v1066_v24 = vmax.f32 %v999_v22, 0.0 }
 0x1f8   : > { %v1080_v25 = vpack.c.bf16 %v1066_v24, %v1065_v23 }
 0x1fb   : > { %v1001_v26 = vpop.f32.mrf.mxu0 }
 0x1fc   : > { %v1002_v27 = vadd.f32 %v1418_v13, %v1001_v26 }
 0x1fe   : > { %v1067_v53 = vmax.f32 %v1002_v27, 0.0 }
 0x203   : > { %v1003_v28 = vpop.f32.mrf.mxu0 }
 0x204   : > { %v1004_v29 = vadd.f32 %v1418_v13, %v1003_v28 }
 0x206   : > { %v1068_v30 = vmax.f32 %v1004_v29, 0.0 }
 0x208   : > { %v1081_v31 = vpack.c.bf16 %v1068_v30, %v1067_v53 }
 0x20a   : > { %v1106_v12 = vsel %vm1095_vm1, %v1081_v31, 0 }
 0x20b   : > { %v1006_v32 = vpop.f32.mrf.mxu0 }
 0x20c   : > { %v1007_v33 = vadd.f32 %v1418_v13, %v1006_v32 }
 0x20e   : > { %v1069_v36 = vmax.f32 %v1007_v33, 0.0 }
 0x213   : > { %v1008_v34 = vpop.f32.mrf.mxu0 }
 0x214   : > { %v1009_v35 = vadd.f32 %v1418_v13, %v1008_v34 }
 0x216   : > { %v1070_v37 = vmax.f32 %v1009_v35, 0.0 }
 0x218   : > { %v1082_v38 = vpack.c.bf16 %v1070_v37, %v1069_v36 }
 0x21a   : > { %v1109_v8 = vsel %vm1095_vm1, %v1082_v38, 0 }
 0x21b   : > { %v1011_v39 = vpop.f32.mrf.mxu0 }
 0x21c   : > { %v1012_v40 = vadd.f32 %v1418_v13, %v1011_v39 }
 0x21e   : > { %v1071_v43 = vmax.f32 %v1012_v40, 0.0 }
 0x223   : > { %v1013_v41 = vpop.f32.mrf.mxu0 }
 0x224   : > { %v1014_v42 = vadd.f32 %v1418_v13, %v1013_v41 }
 0x226   : > { %v1072_v44 = vmax.f32 %v1014_v42, 0.0 }
 0x228   : > { %v1083_v45 = vpack.c.bf16 %v1072_v44, %v1071_v43 }
 0x22a   : > { %v1112_v7 = vsel %vm1095_vm1, %v1083_v45, 0 }
 0x22b   : > { %v1016_v46 = vpop.f32.mrf.mxu0 }
 0x22c   : > { %v1017_v1 = vadd.f32 %v1418_v13, %v1016_v46 }
 0x22e   : > { %v1073_v4 = vmax.f32 %v1017_v1, 0.0 }
 0x233   : > { %v1018_v47 = vpop.f32.mrf.mxu0 }
 0x234   : > { %v1019_v63 = vadd.f32 %v1418_v13, %v1018_v47 }
 0x236   : > { %v1074_v2 = vmax.f32 %v1019_v63, 0.0 }
 0x238   : > { %v1084_v5 = vpack.c.bf16 %v1074_v2, %v1073_v4 }
 0x23a   : > { %v1115_v6 = vsel %vm1095_vm1, %v1084_v5, 0 }
 0x23b   : > { %v1021_v48 = vpop.f32.mrf.mxu0 }
 0x23c   : > { %v1022_v58 = vadd.f32 %v1418_v13, %v1021_v48 }
 0x23e   : > { %v1075_v62 = vmax.f32 %v1022_v58, 0.0 }
 0x242   : > { %v1092_v16 = vpop.permute.xlu0 %1091 }
 0x243   : > { %v1023_v49 = vpop.f32.mrf.mxu0  ;;  %v1094_v17 = vperm.slane %v1092_v16, 0 }
 0x244   : > { %v1024_v10 = vadd.f32 %v1418_v13, %v1023_v49 }
 0x246   : > { %v1076_v60 = vmax.f32 %v1024_v10, 0.0 }
 0x248   : > { %v1085_v0 = vpack.c.bf16 %v1076_v60, %v1075_v62 }
 0x24a   : > { %v1118_v3 = vsel %vm1095_vm1, %v1085_v0, 0 }
 0x24b   : > { %v1026_v50 = vpop.f32.mrf.mxu0 }
 0x24c   : > { %v1027_v51 = vadd.f32 %v1418_v13, %v1026_v50 }
 0x24e   : > { %v1077_v56 = vmax.f32 %v1027_v51, 0.0 }
 0x253   : > { %v1028_v52 = vpop.f32.mrf.mxu0 }
 0x254   : > { %v1029_v54 = vadd.f32 %v1418_v13, %v1028_v52  ;;  %v1103_v13 = vsel %vm1095_vm1, %v1080_v25, 0 }
 0x256   : > { %v1078_v57 = vmax.f32 %v1029_v54, 0.0 }
 0x258   : > { %v1086_v59 = vpack.c.bf16 %v1078_v57, %v1077_v56 }
 0x25a   : > { %v1121_v61 = vsel %vm1095_vm1, %v1086_v59, 0 }
 0x25b   : > { %1123 = vmatpush.bf16.xpose.msra.mxu1 %v1121_v61 }
 0x263   : > { %1124 = vmatpush.bf16.xpose.msra.mxu1 %v1118_v3 }
 0x26b   : > { %1125 = vmatpush.bf16.xpose.msra.mxu1 %v1115_v6 }
 0x273   : > { %1126 = vmatpush.bf16.xpose.msra.mxu1 %v1112_v7 }
 0x27b   : > { %1127 = vmatpush.bf16.xpose.msra.mxu1 %v1109_v8 }
 0x283   : > { %1128 = vmatpush.bf16.xpose.msra.mxu1 %v1106_v12 }
 0x28b   : > { %1129 = vmatpush.bf16.xpose.msra.mxu1 %v1103_v13 }
 0x293   : > { %1130 = vmatpush.bf16.xpose.msra.mxu1 %v1100_v14 }
 0x29a   : > { %1339 = vmatmul.msk.bf16.vlgmr.msra.gmra.mxu1 %vm1095_vm1, %v1087_v15 }
 0x317   : > { %v1132_v18 = vpop.f32.mrf.mxu1 }
 0x318   : > { %v1133_v19 = vadd.f32 %v1132_v18, %v1094_v17 }
 0x31a   : > { %1136 = vst [vmem:[%s339_s25] sm:$0x1] %v1133_v19 }
 0x31b   : > { %1446 = shalt.err (!%p1443_p3)
}
 0x31c   : > { %1376 = dma.vmem_to_hbm [thread:$0]  (%p1575_p5), %s1149_s26, 16, %s1151_s27, %s1138_s28  }
 0x31f   : > { %v1134_v55 = vpop.f32.mrf.mxu1 }
 0x320 PF: > { %p1382_p4 = scmp.ge.s32.totalorder %s1481_s14, 2  ;;  %s1162_s18 = sand.u32 1, %s1469_s11  }
 0x321   : > { %s1163_s23 = scalar_lea.sflag [#allocation4], %s1162_s18 }
 0x322   : > { %p1379_p7 = pnand %p1382_p4, %p1579_p6 }
 0x324   : > { %p1380_p8 = pneg %p1379_p7 }
 0x326   : > { %1464 = dma.done.wait (%p1380_p8), %s1163_s23, 16  }
 0x327   : > { %1466 = vsyncadd (%p1380_p8), %s1163_s23, 4294967280  ;;  %p21_p9 = scmp.ge.s32.totalorder %s1562_s16, 4   ;;  %s1841_s11 = smov %s1473_s12 }
 0x328   : > { %s1842_s12 = smov %s1477_s13  ;;  %s1843_s13 = smov %s1573_s19 }
 0x329   : > { %s1844_s14 = smov %s1562_s16  ;;  %23 = sbr.rel (!%p21_p9) target bundleno = 6 (0x6), region = 91 }
 0x32e   :  { %1168 = vsyncpa [#allocation4], 1 }
 0x32f   :  { %1170 = vsyncpa [#allocation4 + $0x1], 1 }

</bundles_post_ra>
